<compile_context>
chip_gen: v7x
topology: tpu7x:2x2x1
jax: 0.10.0
libtpu: 0.0.40
codegen_flags: <defaults>
</compile_context>

<pallas_src>
import functools

import jax
import jax.numpy as jnp
from jax.experimental import pallas as pl
from jax.experimental.pallas import tpu as pltpu

_VMEM_LIMIT = 48 * 1024 * 1024  # safe on v5e/v6e (128 MiB) and v7x (64 MiB)


def _round_up(v, m):
    return ((v + m - 1) // m) * m


def _pick_tm(m):
    if m >= 1024:
        return 512
    if m >= 256:
        return 256
    return _round_up(m, 8)


# ----------------------------- Pallas kernels ------------------------------

def _gemm_kernel(x_ref, w_ref, s_ref, b_ref, o_ref, acc_ref, *, relu):
    k = pl.program_id(2)

    @pl.when(k == 0)
    def _():
        acc_ref[...] = jnp.zeros_like(acc_ref)

    acc_ref[...] += jnp.dot(x_ref[...], w_ref[...],
                            preferred_element_type=jnp.float32)

    @pl.when(k == pl.num_programs(2) - 1)
    def _():
        y = acc_ref[...] * s_ref[...] + b_ref[...]
        if relu:
            y = jnp.maximum(y, 0.0)
        o_ref[...] = y.astype(o_ref.dtype)


def _gemm_res_kernel(x_ref, w_ref, s_ref, b_ref, r_ref, o_ref, acc_ref, *, relu):
    k = pl.program_id(2)

    @pl.when(k == 0)
    def _():
        acc_ref[...] = jnp.zeros_like(acc_ref)

    acc_ref[...] += jnp.dot(x_ref[...], w_ref[...],
                            preferred_element_type=jnp.float32)

    @pl.when(k == pl.num_programs(2) - 1)
    def _():
        y = acc_ref[...] * s_ref[...] + b_ref[...] + r_ref[...].astype(jnp.float32)
        if relu:
            y = jnp.maximum(y, 0.0)
        o_ref[...] = y.astype(o_ref.dtype)


def _conv_s1_kernel(off_ref, xf_ref, w_ref, s_ref, b_ref, o_ref,
                    acc_ref, lhs_ref, sem_ref, *, tm, relu):
    # Shift-and-crop "same" conv: K grid axis enumerates the kh*kw taps; LHS rows for
    # tap t are the flattened padded activation shifted by off_ref[t] rows, manually
    # DMA'd from HBM into a double-buffered VMEM scratch.
    i = pl.program_id(0)
    k = pl.program_id(2)
    nk = pl.num_programs(2)
    slot = k % 2

    def start_fetch(tap, slot_):
        row = i * tm + off_ref[tap]
        pltpu.make_async_copy(xf_ref.at[pl.ds(row, tm)],
                              lhs_ref.at[slot_],
                              sem_ref.at[slot_]).start()

    @pl.when(k == 0)
    def _():
        acc_ref[...] = jnp.zeros_like(acc_ref)
        start_fetch(0, 0)

    @pl.when(k + 1 < nk)
    def _():
        start_fetch(k + 1, 1 - slot)

    # Wait for the current tap's LHS tile (same shape as every issued copy).
    pltpu.make_async_copy(xf_ref.at[pl.ds(i * tm, tm)],
                          lhs_ref.at[slot],
                          sem_ref.at[slot]).wait()

    acc_ref[...] += jnp.dot(lhs_ref[slot], w_ref[0],
                            preferred_element_type=jnp.float32)

    @pl.when(k == nk - 1)
    def _():
        y = acc_ref[...] * s_ref[...] + b_ref[...]
        if relu:
            y = jnp.maximum(y, 0.0)
        o_ref[...] = y.astype(o_ref.dtype)


# ----------------------------- kernel wrappers ------------------------------

@functools.partial(jax.jit, static_argnames=("relu",))
def _gemm(x2d, w2d, scale, shift, residual=None, *, relu=True):
    """Tiled GEMM with fused affine (+residual) (+ReLU) epilogue. Output bf16."""
    m, kdim = x2d.shape
    _, ncols = w2d.shape
    tm = _pick_tm(m)
    tk = 512 if kdim > 512 else _round_up(kdim, 128)
    tn = min(_round_up(ncols, 128), 512)
    mp = _round_up(m, tm)
    kp = _round_up(kdim, tk)
    np_ = _round_up(ncols, tn)

    xq = jnp.pad(x2d.astype(jnp.bfloat16), ((0, mp - m), (0, kp - kdim)))
    wq = jnp.pad(w2d.astype(jnp.bfloat16), ((0, kp - kdim), (0, np_ - ncols)))
    sp = jnp.pad(scale.reshape(1, ncols).astype(jnp.float32),
                 ((0, 0), (0, np_ - ncols)))
    bp = jnp.pad(shift.reshape(1, ncols).astype(jnp.float32),
                 ((0, 0), (0, np_ - ncols)))

    in_specs = [
        pl.BlockSpec((tm, tk), lambda i, j, k: (i, k)),
        pl.BlockSpec((tk, tn), lambda i, j, k: (k, j)),
        pl.BlockSpec((1, tn), lambda i, j, k: (0, j)),
        pl.BlockSpec((1, tn), lambda i, j, k: (0, j)),
    ]
    args = [xq, wq, sp, bp]
    if residual is not None:
        rq = jnp.pad(residual.astype(jnp.bfloat16),
                     ((0, mp - m), (0, np_ - ncols)))
        in_specs.append(pl.BlockSpec((tm, tn), lambda i, j, k: (i, j)))
        args.append(rq)
        kern = functools.partial(_gemm_res_kernel, relu=relu)
    else:
        kern = functools.partial(_gemm_kernel, relu=relu)

    out = pl.pallas_call(
        kern,
        out_shape=jax.ShapeDtypeStruct((mp, np_), jnp.bfloat16),
        grid_spec=pltpu.PrefetchScalarGridSpec(
            num_scalar_prefetch=0,
            grid=(mp // tm, np_ // tn, kp // tk),
            in_specs=in_specs,
            out_specs=pl.BlockSpec((tm, tn), lambda i, j, k: (i, j)),
            scratch_shapes=[pltpu.VMEM((tm, tn), jnp.float32)]),
        compiler_params=pltpu.CompilerParams(
            dimension_semantics=("parallel", "parallel", "arbitrary"),
            vmem_limit_bytes=_VMEM_LIMIT),
        cost_estimate=pl.CostEstimate(
            flops=2 * mp * np_ * kp,
            transcendentals=0,
            bytes_accessed=2 * (mp * kp + kp * np_ + 2 * mp * np_)),
    )(*args)
    return out[:m, :ncols]


@functools.partial(jax.jit, static_argnames=("dilation", "padding", "relu"))
def _conv_s1_same(x, w, scale, shift, *, dilation, padding, relu):
    """Stride-1 'same' kxk conv without materialized im2col (shift-and-crop)."""
    n, h, wd, cin = x.shape
    kh, kw, _, cout = w.shape
    d, p = dilation, padding
    hp, wp = h + 2 * p, wd + 2 * p
    t = kh * kw

    xq = jnp.pad(x.astype(jnp.bfloat16), ((0, 0), (p, p), (p, p), (0, 0)))
    m_raw = n * hp * wp
    tm = _pick_tm(m_raw)
    mp = _round_up(m_raw, tm)
    kp = _round_up(cin, 128)
    tn = min(_round_up(cout, 128), 512)
    np_ = _round_up(cout, tn)
    max_off = (kh - 1) * d * wp + (kw - 1) * d

    xf = xq.reshape(m_raw, cin)
    xf = jnp.pad(xf, ((0, mp + max_off - m_raw), (0, kp - cin)))
    wt = jnp.pad(w.reshape(t, cin, cout),
                 ((0, 0), (0, kp - cin), (0, np_ - cout))).astype(jnp.bfloat16)
    sp = jnp.pad(scale.reshape(1, cout).astype(jnp.float32),
                 ((0, 0), (0, np_ - cout)))
    bp = jnp.pad(shift.reshape(1, cout).astype(jnp.float32),
                 ((0, 0), (0, np_ - cout)))
    off = jnp.asarray([i * d * wp + j * d for i in range(kh) for j in range(kw)],
                      jnp.int32)

    kern = functools.partial(_conv_s1_kernel, tm=tm, relu=relu)
    out = pl.pallas_call(
        kern,
        out_shape=jax.ShapeDtypeStruct((mp, np_), jnp.bfloat16),
        grid_spec=pltpu.PrefetchScalarGridSpec(
            num_scalar_prefetch=1,
            grid=(mp // tm, np_ // tn, t),
            in_specs=[
                pl.BlockSpec(memory_space=pl.ANY),                           # LHS in HBM
                pl.BlockSpec((1, kp, tn), lambda i, j, k, off: (k, 0, j)),   # per-tap W
                pl.BlockSpec((1, tn), lambda i, j, k, off: (0, j)),          # scale
                pl.BlockSpec((1, tn), lambda i, j, k, off: (0, j)),          # shift
            ],
            out_specs=pl.BlockSpec((tm, tn), lambda i, j, k, off: (i, j)),
            scratch_shapes=[
                pltpu.VMEM((tm, tn), jnp.float32),          # accumulator
                pltpu.VMEM((2, tm, kp), jnp.bfloat16),      # double-buffered LHS
                pltpu.SemaphoreType.DMA((2,)),
            ]),
        compiler_params=pltpu.CompilerParams(
            dimension_semantics=("parallel", "parallel", "arbitrary"),
            vmem_limit_bytes=_VMEM_LIMIT),
        cost_estimate=pl.CostEstimate(
            flops=2 * mp * np_ * kp * t,
            transcendentals=0,
            bytes_accessed=2 * (mp * kp * t + t * kp * np_ + mp * np_)),
    )(off, xf, wt, sp, bp)

    y = out[:m_raw, :cout].reshape(n, hp, wp, cout)
    return y[:, :h, :wd, :]


def _extract_patches(x, kh, kw, stride, dilation, padding, pad_value):
    # x: (N, H, W, C) -> (N, Ho, Wo, kh*kw, C)   (only used for the 2 strided convs)
    n, h, w, c = x.shape
    xp = jnp.pad(x, ((0, 0), (padding, padding), (padding, padding), (0, 0)),
                 constant_values=pad_value)
    ho = (h + 2 * padding - dilation * (kh - 1) - 1) // stride + 1
    wo = (w + 2 * padding - dilation * (kw - 1) - 1) // stride + 1
    taps = []
    for i in range(kh):
        for j in range(kw):
            h0, w0 = i * dilation, j * dilation
            sl = jax.lax.slice(
                xp, (0, h0, w0, 0),
                (n, h0 + (ho - 1) * stride + 1, w0 + (wo - 1) * stride + 1, c),
                (1, stride, stride, 1))
            taps.append(sl)
    patches = jnp.stack(taps, axis=3)
    return patches, ho, wo


@functools.partial(jax.jit, static_argnames=("stride", "dilation", "padding", "relu"))
def _conv_im2col(x, w, scale, shift, *, stride, dilation, padding, relu):
    # Fallback only for the 7x7/s2 stem and layer2.0 conv2 (3x3/s2).
    kh, kw, cin, cout = w.shape
    n = x.shape[0]
    patches, ho, wo = _extract_patches(x.astype(jnp.bfloat16), kh, kw, stride,
                                       dilation, padding, 0.0)
    m = n * ho * wo
    pm = patches.reshape(m, kh * kw * cin)
    out = _gemm(pm, w.reshape(kh * kw * cin, cout), scale, shift, relu=relu)
    return out.reshape(n, ho, wo, cout)


@jax.jit
def max_pool_3x3_s2(x):
    # Tap-wise max in XLA (per perf review): no 9x patch tensor, no transpose.
    n, h, w, c = x.shape
    neg = jnp.finfo(x.dtype).min
    xp = jnp.pad(x, ((0, 0), (1, 1), (1, 1), (0, 0)), constant_values=neg)
    ho = (h - 1) // 2 + 1
    wo = (w - 1) // 2 + 1
    out = None
    for i in range(3):
        for j in range(3):
            sl = jax.lax.slice(xp, (0, i, j, 0),
                               (n, i + (ho - 1) * 2 + 1, j + (wo - 1) * 2 + 1, c),
                               (1, 2, 2, 1))
            out = sl if out is None else jnp.maximum(out, sl)
    return out


def conv_bn_act(x, w, scale, shift, *, stride=1, dilation=1, padding=0,
                relu=True, residual=None):
    # x: (N, H, W, Cin) bf16, w: (kh, kw, Cin, Cout) f32
    kh, kw, cin, cout = w.shape
    if kh == 1 and kw == 1:
        assert padding == 0
        if stride > 1:
            x = x[:, ::stride, ::stride, :]   # 1x1/stride-s conv == subsample + GEMM
        n, h, wd, _ = x.shape
        m = n * h * wd
        rm = residual.reshape(m, cout) if residual is not None else None
        out = _gemm(x.reshape(m, cin), w.reshape(cin, cout), scale, shift, rm,
                    relu=relu)
        return out.reshape(n, h, wd, cout)
    if stride == 1:
        assert residual is None
        assert kh == kw and padding == dilation * (kh - 1) // 2  # 'same' conv
        return _conv_s1_same(x, w, scale, shift, dilation=dilation,
                             padding=padding, relu=relu)
    assert residual is None
    return _conv_im2col(x, w, scale, shift, stride=stride, dilation=dilation,
                        padding=padding, relu=relu)


# ------------------------------ parameters ----------------------------------

class _Init:
    def __init__(self, key):
        self._key = key
        self._n = 0

    def _next(self):
        k = jax.random.fold_in(self._key, self._n)
        self._n += 1
        return k

    def conv(self, kh, kw, cin, cout):
        fan_in = kh * kw * cin
        return (jax.random.normal(self._next(), (kh, kw, cin, cout), jnp.float32)
                * (2.0 / fan_in) ** 0.5)

    def bn(self, c):
        return {"gamma": jnp.ones((c,), jnp.float32),
                "beta": jnp.zeros((c,), jnp.float32),
                "mean": jnp.zeros((c,), jnp.float32),
                "var": jnp.ones((c,), jnp.float32)}

    def bias(self, c):
        return 0.01 * jax.random.normal(self._next(), (c,), jnp.float32)


def _bn_fold(bn, eps=1e-5):
    scale = bn["gamma"] / jnp.sqrt(bn["var"] + eps)
    shift = bn["beta"] - bn["mean"] * scale
    return scale, shift


def _make_bottleneck(init, inplanes, planes, stride, dilation, downsample):
    p = {"conv1": init.conv(1, 1, inplanes, planes), "bn1": init.bn(planes),
         "conv2": init.conv(3, 3, planes, planes), "bn2": init.bn(planes),
         "conv3": init.conv(1, 1, planes, planes * 4), "bn3": init.bn(planes * 4),
         "stride": stride, "dilation": dilation}
    if downsample:
        p["down_conv"] = init.conv(1, 1, inplanes, planes * 4)
        p["down_bn"] = init.bn(planes * 4)
    return p


def _make_layer(init, inplanes, planes, blocks, stride, dilate, dilation):
    previous_dilation = dilation
    if dilate:
        dilation *= stride
        stride = 1
    downsample = (stride != 1) or (inplanes != planes * 4)
    layer = [_make_bottleneck(init, inplanes, planes, stride, previous_dilation,
                              downsample)]
    inplanes = planes * 4
    for _ in range(1, blocks):
        layer.append(_make_bottleneck(init, inplanes, planes, 1, dilation, False))
    return layer, inplanes, dilation


def _make_head(init, cin, num_classes):
    # Conv2d(cin,128,3x3,pad1,no bias) -> BN(128) -> ReLU -> Dropout -> Conv2d(128,nc,1x1)
    return {"conv1": init.conv(3, 3, cin, 128), "bn": init.bn(128),
            "conv2": init.conv(1, 1, 128, num_classes),
            "bias": init.bias(num_classes)}


def init_params(key, num_classes=4):
    init = _Init(key)
    p = {"conv1": init.conv(7, 7, 3, 64), "bn1": init.bn(64)}
    inplanes, dilation = 64, 1
    # ResNet-101 with replace_stride_with_dilation = [False, True, True]
    p["layer1"], inplanes, dilation = _make_layer(init, inplanes, 64, 3, 1, False, dilation)
    p["layer2"], inplanes, dilation = _make_layer(init, inplanes, 128, 4, 2, False, dilation)
    p["layer3"], inplanes, dilation = _make_layer(init, inplanes, 256, 23, 2, True, dilation)
    p["layer4"], inplanes, dilation = _make_layer(init, inplanes, 512, 3, 2, True, dilation)
    p["classifier"] = _make_head(init, 2048, num_classes)
    p["aux_classifier"] = _make_head(init, 1024, num_classes)
    return p


# ------------------------------- forward ------------------------------------

def _bottleneck_forward(x, p):
    if "down_conv" in p:
        s, b = _bn_fold(p["down_bn"])
        identity = conv_bn_act(x, p["down_conv"], s, b, stride=p["stride"], relu=False)
    else:
        identity = x
    s, b = _bn_fold(p["bn1"])
    out = conv_bn_act(x, p["conv1"], s, b, relu=True)
    s, b = _bn_fold(p["bn2"])
    out = conv_bn_act(out, p["conv2"], s, b, stride=p["stride"],
                      dilation=p["dilation"], padding=p["dilation"], relu=True)
    s, b = _bn_fold(p["bn3"])
    out = conv_bn_act(out, p["conv3"], s, b, residual=identity)  # add + relu fused
    return out


def _head_forward(x, p):
    s, b = _bn_fold(p["bn"])
    x = conv_bn_act(x, p["conv1"], s, b, padding=1, relu=True)
    # Dropout(p=0.1): identity (inference mode)
    ones = jnp.ones((p["conv2"].shape[-1],), jnp.float32)
    x = conv_bn_act(x, p["conv2"], ones, p["bias"], relu=False)
    return x


def pretrained_resnet_forward(x_nchw, params):
    # x_nchw: (N, 3, H, W) f32 -> {'out','aux'}: (N, num_classes, H//8, W//8) (no upsample)
    x = jnp.transpose(x_nchw, (0, 2, 3, 1)).astype(jnp.bfloat16)  # NHWC bf16 internally
    s, b = _bn_fold(params["bn1"])
    x = conv_bn_act(x, params["conv1"], s, b, stride=2, padding=3, relu=True)
    x = max_pool_3x3_s2(x)
    for blk in params["layer1"]:
        x = _bottleneck_forward(x, blk)
    for blk in params["layer2"]:
        x = _bottleneck_forward(x, blk)
    for blk in params["layer3"]:
        x = _bottleneck_forward(x, blk)
    aux = x                      # features['aux'] (1024 channels)
    for blk in params["layer4"]:
        x = _bottleneck_forward(x, blk)
    out = _head_forward(x, params["classifier"])          # features['out'] (2048 ch)
    aux = _head_forward(aux, params["aux_classifier"])
    return {"out": jnp.transpose(out, (0, 3, 1, 2)).astype(jnp.float32),
            "aux": jnp.transpose(aux, (0, 3, 1, 2)).astype(jnp.float32)}


# --------------------------------- main --------------------------------------

if __name__ == "__main__":
    key = jax.random.PRNGKey(0)
    pkey, xkey = jax.random.split(key)
    params = init_params(pkey, num_classes=4)
    x = jax.random.normal(xkey, (2, 3, 32, 32), jnp.float32)  # NCHW, like PyTorch

    result = pretrained_resnet_forward(x, params)
    result = jax.block_until_ready(result)

    assert result["out"].shape == (2, 4, 4, 4), result["out"].shape
    assert result["aux"].shape == (2, 4, 4, 4), result["aux"].shape
    assert bool(jnp.all(jnp.isfinite(result["out"])))
    assert bool(jnp.all(jnp.isfinite(result["aux"])))
    print("KERNEL_OK")
</pallas_src>

<mosaic_0001>
module attributes {stable_mosaic.version = 11 : i64} {
  func.func @_gemm_kernel(%arg0: i32, %arg1: i32, %arg2: i32, %arg3: memref<256x256xbf16, #tpu.memory_space<vmem>>, %arg4: memref<256x128xbf16, #tpu.memory_space<vmem>>, %arg5: memref<1x128xf32, #tpu.memory_space<vmem>>, %arg6: memref<1x128xf32, #tpu.memory_space<vmem>>, %arg7: memref<256x128xbf16, #tpu.memory_space<vmem>>, %arg8: memref<256x128xf32, #tpu.memory_space<vmem>>) attributes {dimension_semantics = [#tpu.dimension_semantics<parallel>, #tpu.dimension_semantics<parallel>, #tpu.dimension_semantics<arbitrary>], iteration_bounds = array<i64: 2, 1, 1>, scalar_prefetch = 0 : i64, scratch_operands = 1 : i64, tpu.core_type = #tpu.core_type<tc>, window_params = [{transform_indices = @transform_0, window_bounds = array<i64: 256, 256>}, {transform_indices = @transform_1, window_bounds = array<i64: 256, 128>}, {transform_indices = @transform_2, window_bounds = array<i64: 1, 128>}, {transform_indices = @transform_3, window_bounds = array<i64: 1, 128>}, {transform_indices = @transform_4, window_bounds = array<i64: 256, 128>}]} {
    %c0_i32 = arith.constant 0 : i32
    %0 = arith.cmpi eq, %arg2, %c0_i32 : i32
    %1 = arith.extui %0 : i1 to i32
    %c0_i32_0 = arith.constant 0 : i32
    %2 = arith.cmpi ne, %1, %c0_i32_0 : i32
    scf.if %2 {
      %cst_10 = arith.constant 0.000000e+00 : f32
      %12 = vector.broadcast %cst_10 : f32 to vector<256x128xf32>
      %c0_11 = arith.constant 0 : index
      %c0_12 = arith.constant 0 : index
      %13 = vector.load %arg8[%c0_11, %c0_12] : memref<256x128xf32, #tpu.memory_space<vmem>>, vector<256x128xf32>
      tpu.vector_store %arg8[%c0_11, %c0_12], %12 {strides = array<i32>} : memref<256x128xf32, #tpu.memory_space<vmem>>, vector<256x128xf32>,
    } else {
    }
    %c0 = arith.constant 0 : index
    %c0_1 = arith.constant 0 : index
    %3 = vector.load %arg8[%c0, %c0_1] : memref<256x128xf32, #tpu.memory_space<vmem>>, vector<256x128xf32>
    %c0_2 = arith.constant 0 : index
    %c0_3 = arith.constant 0 : index
    %4 = vector.load %arg3[%c0_2, %c0_3] : memref<256x256xbf16, #tpu.memory_space<vmem>>, vector<256x256xbf16>
    %c0_4 = arith.constant 0 : index
    %c0_5 = arith.constant 0 : index
    %5 = vector.load %arg4[%c0_4, %c0_5] : memref<256x128xbf16, #tpu.memory_space<vmem>>, vector<256x128xbf16>
    %cst = arith.constant dense<0.000000e+00> : vector<256x128xf32>
    %6 = tpu.matmul %4, %5, %cst {dimension_numbers = #tpu.dot_dimension_numbers<[1], [0], [0], [1], [0, 0, 1, 1], [], []>} : vector<256x256xbf16>, vector<256x128xbf16>, vector<256x128xf32> -> vector<256x128xf32>
    %7 = arith.addf %3, %6 : vector<256x128xf32>
    %c0_6 = arith.constant 0 : index
    %c0_7 = arith.constant 0 : index
    %8 = vector.load %arg8[%c0_6, %c0_7] : memref<256x128xf32, #tpu.memory_space<vmem>>, vector<256x128xf32>
    tpu.vector_store %arg8[%c0_6, %c0_7], %7 {strides = array<i32>} : memref<256x128xf32, #tpu.memory_space<vmem>>, vector<256x128xf32>,
    %c0_i32_8 = arith.constant 0 : i32
    %9 = arith.cmpi eq, %arg2, %c0_i32_8 : i32
    %10 = arith.extui %9 : i1 to i32
    %c0_i32_9 = arith.constant 0 : i32
    %11 = arith.cmpi ne, %10, %c0_i32_9 : i32
    scf.if %11 {
      %c0_10 = arith.constant 0 : index
      %c0_11 = arith.constant 0 : index
      %12 = vector.load %arg8[%c0_10, %c0_11] : memref<256x128xf32, #tpu.memory_space<vmem>>, vector<256x128xf32>
      %c0_12 = arith.constant 0 : index
      %c0_13 = arith.constant 0 : index
      %13 = vector.load %arg5[%c0_12, %c0_13] : memref<1x128xf32, #tpu.memory_space<vmem>>, vector<1x128xf32>
      %14 = vector.broadcast %13 : vector<1x128xf32> to vector<256x128xf32>
      %15 = arith.mulf %12, %14 : vector<256x128xf32>
      %c0_14 = arith.constant 0 : index
      %c0_15 = arith.constant 0 : index
      %16 = vector.load %arg6[%c0_14, %c0_15] : memref<1x128xf32, #tpu.memory_space<vmem>>, vector<1x128xf32>
      %17 = vector.broadcast %16 : vector<1x128xf32> to vector<256x128xf32>
      %18 = arith.addf %15, %17 : vector<256x128xf32>
      %cst_16 = arith.constant 0.000000e+00 : f32
      %19 = vector.broadcast %cst_16 : f32 to vector<256x128xf32>
      %20 = arith.maximumf %18, %19 : vector<256x128xf32>
      %21 = arith.truncf %20 : vector<256x128xf32> to vector<256x128xbf16>
      %c0_17 = arith.constant 0 : index
      %c0_18 = arith.constant 0 : index
      %22 = vector.load %arg7[%c0_17, %c0_18] : memref<256x128xbf16, #tpu.memory_space<vmem>>, vector<256x128xbf16>
      tpu.vector_store %arg7[%c0_17, %c0_18], %21 {strides = array<i32>} : memref<256x128xbf16, #tpu.memory_space<vmem>>, vector<256x128xbf16>,
    } else {
    }
    return
  }
  func.func @transform_0(%arg0: i32, %arg1: i32, %arg2: i32) -> (i32, i32) {
    %c0_i32 = arith.constant 0 : i32
    return %arg0, %arg2 : i32, i32
  }
  func.func @transform_1(%arg0: i32, %arg1: i32, %arg2: i32) -> (i32, i32) {
    %c0_i32 = arith.constant 0 : i32
    return %arg2, %arg1 : i32, i32
  }
  func.func @transform_2(%arg0: i32, %arg1: i32, %arg2: i32) -> (i32, i32) {
    %c0_i32 = arith.constant 0 : i32
    %c0_i32_0 = arith.constant 0 : i32
    return %c0_i32, %arg1 : i32, i32
  }
  func.func @transform_3(%arg0: i32, %arg1: i32, %arg2: i32) -> (i32, i32) {
    %c0_i32 = arith.constant 0 : i32
    %c0_i32_0 = arith.constant 0 : i32
    return %c0_i32, %arg1 : i32, i32
  }
  func.func @transform_4(%arg0: i32, %arg1: i32, %arg2: i32) -> (i32, i32) {
    %c0_i32 = arith.constant 0 : i32
    return %arg0, %arg1 : i32, i32
  }
}

</mosaic_0001>

<bundles_post_ra>
// kernel: _gemm.1
= control target key start
LH: loop header
LB: loop body
LE: loop exit
PB: predicated region body
PF: predicated region fallthrough
CT: control target
= control target key end

     0   :  { %s1843_s15 = smov 0   ;;  %s1845_s16 = smov 0   ;;  %s2054_s0 = inlined_call_operand.vmem [shape: bf16[512,256], index: 0, kind: input, shape index: {}]   ;;  %s2055_s1 = inlined_call_operand.vmem [shape: bf16[256,128], index: 1, kind: input, shape index: {}]   ;;  %s2056_s2 = inlined_call_operand.vmem [shape: f32[1,128], index: 2, kind: input, shape index: {}]   ;;  %s2057_s3 = inlined_call_operand.vmem [shape: f32[1,128], index: 3, kind: input, shape index: {}]   ;;  %s2058_s4 = inlined_call_operand.vmem [shape: bf16[512,128], index: 4, kind: output, shape index: {}]  }
   0x1   :  { %s1847_s17 = smov 0  }
   0x2 LB: > { %s33_s18 = sadd.s32 1, %s1812_s16  ;;  %p1360_p0 = scmp.ge.s32.totalorder %s1816_s17, 1  ;;  %s1816_s17 = sphi %s1847_s17, %s14_s17   ;;  %s1812_s16 = sphi %s1845_s16, %s2060_s16   ;;  %s1808_s15 = sphi %s1843_s15, %s2059_s15  }
   0x3   : > { %p35_p1 = scmp.ge.s32.totalorder %s33_s18, 2  ;;  %p224_p2 = scmp.lt.s32.totalorder %s1816_s17, 3 }
   0x5   : > { %s2062_s18 = smov (%p35_p1, %s33_s18), 0  ;;  %p225_p3 = pnand %p1360_p0, %p224_p2 }
   0x6   : > { %v1730_v0 = vld [vmem:[%s2055_s1 + $0x40] sm:$0xff] (!%p225_p3)   ;;  %s1361_s21 = sshll.u32 (!%p225_p3), %s1808_s15, 5  ;;  %v1732_v2 = vld [vmem:[%s2055_s1 + $0x48] sm:$0xff] (!%p225_p3)   ;;  %v1734_v4 = vld [vmem:[%s2055_s1 + $0x50] sm:$0xff] (!%p225_p3)  }
   0x7   : > { %228 = sbr.rel (%p225_p3) target bundleno = 322 (0x142), region = 36  ;;  %v1731_v1 = vld [vmem:[%s2055_s1] sm:$0xff] (!%p225_p3)   ;;  %1578 = vmatprep.subr.bf16.mxu0 (!%p225_p3), %v1730_v0  ;;  %1690 = vmatprep.subr.bf16.mxu1 (!%p225_p3), %v1730_v0  ;;  %v1733_v3 = vld [vmem:[%s2055_s1 + $0x8] sm:$0xff] (!%p225_p3)   ;;  %p274_p4 = scmp.lt.s32.totalorder (!%p225_p3), %s1361_s21, 63  ;;  %v1735_v5 = vld [vmem:[%s2055_s1 + $0x10] sm:$0xff] (!%p225_p3)  }
   0x8   : > { %1579 = vmatpush3.bf16.msra.mxu0 (!%p225_p3), %v1731_v1  ;;  %1698 = vmatpush3.bf16.msra.mxu1 (!%p225_p3), %v1731_v1  ;;  %v1736_v6 = vld [vmem:[%s2055_s1 + $0x58] sm:$0xff] (!%p225_p3)   ;;  %v1738_v8 = vld [vmem:[%s2055_s1 + $0x60] sm:$0xff] (!%p225_p3)   ;;  %v1740_v10 = vld [vmem:[%s2055_s1 + $0x68] sm:$0xff] (!%p225_p3)  }
   0x9   : > { %1580 = vmatprep.subr.bf16.mxu0 (!%p225_p3), %v1732_v2  ;;  %1691 = vmatprep.subr.bf16.mxu1 (!%p225_p3), %v1732_v2  ;;  %v1737_v7 = vld [vmem:[%s2055_s1 + $0x18] sm:$0xff] (!%p225_p3)   ;;  %v1739_v9 = vld [vmem:[%s2055_s1 + $0x20] sm:$0xff] (!%p225_p3)   ;;  %v1741_v13 = vld [vmem:[%s2055_s1 + $0x28] sm:$0xff] (!%p225_p3)  }
   0xa   : > { %v1742_v14 = vld [vmem:[%s2055_s1 + $0x70] sm:$0xff] (!%p225_p3)   ;;  %v1744_v16 = vld [vmem:[%s2055_s1 + $0x78] sm:$0xff] (!%p225_p3)   ;;  %v1952_v51 = vld [vmem:[%s2056_s2] ss:$0 sm:$0xff] (!%p225_p3) }
   0xb   : > { %v1743_v15 = vld [vmem:[%s2055_s1 + $0x30] sm:$0xff] (!%p225_p3)   ;;  %v1745_v17 = vld [vmem:[%s2055_s1 + $0x38] sm:$0xff] (!%p225_p3)   ;;  %v1957_v57 = vld [vmem:[%s2057_s3] ss:$0 sm:$0xff] (!%p225_p3) }
   0xc   : > { %1581 = vmatpush3.bf16.msra.mxu0 (!%p225_p3), %v1733_v3  ;;  %1699 = vmatpush3.bf16.msra.mxu1 (!%p225_p3), %v1733_v3 }
   0xd   : > { %1582 = vmatprep.subr.bf16.mxu0 (!%p225_p3), %v1734_v4  ;;  %1692 = vmatprep.subr.bf16.mxu1 (!%p225_p3), %v1734_v4 }
   0xe   : > { %s2064_s21 = smov (!%p274_p4, %s1361_s21), 63 }
   0xf   : > { %s1450_s10 = sshll.u32 %s2064_s21, 3  ;;  %s1365_s12 = sshll.u32 %s2064_s21, 2 }
  0x10   : > { %1583 = vmatpush3.bf16.msra.mxu0 %v1735_v5  ;;  %1700 = vmatpush3.bf16.msra.mxu1 %v1735_v5  ;;  %s1894_s15 = scalar_lea.vmem %s2054_s0, %s1450_s10  ;;  %s1971_s21 = scalar_lea.vmem %s2058_s4, %s1365_s12 }
  0x11   : > { %1584 = vmatprep.subr.bf16.mxu0 %v1736_v6  ;;  %1693 = vmatprep.subr.bf16.mxu1 %v1736_v6  ;;  %v1748_v11 = vld [vmem:[%s1894_s15 + $0x4] ss:$8 sps:$4 sm:$0xff]   ;;  %v1746_v18 = vld [vmem:[%s1894_s15] ss:$8 sps:$4 sm:$0xff]   ;;  %v1752_v20 = vld [vmem:[%s1894_s15 + $0x14] ss:$8 sps:$4 sm:$0xff]  }
  0x12   : > { %v1751_v12 = vld [vmem:[%s1894_s15 + $0x84] ss:$8 sps:$4 sm:$0xff]   ;;  %729 = vmatprep.mubr.bf16.mxu0 %v1748_v11  ;;  %v1749_v19 = vld [vmem:[%s1894_s15 + $0x80] ss:$8 sps:$4 sm:$0xff]   ;;  %v1754_v21 = vld [vmem:[%s1894_s15 + $0x94] ss:$8 sps:$4 sm:$0xff]  }
  0x13   : > { %793 = vmatprep.mubr.bf16.mxu1 %v1751_v12  ;;  %v1756_v22 = vld [vmem:[%s1894_s15 + $0x10] ss:$8 sps:$4 sm:$0xff]   ;;  %v1758_v24 = vld [vmem:[%s1894_s15 + $0x24] ss:$8 sps:$4 sm:$0xff]   ;;  %v1762_v26 = vld [vmem:[%s1894_s15 + $0x20] ss:$8 sps:$4 sm:$0xff]  }
  0x14   : > { %1585 = vmatpush3.bf16.msra.mxu0 %v1737_v7  ;;  %1701 = vmatpush3.bf16.msra.mxu1 %v1737_v7  ;;  %v1757_v23 = vld [vmem:[%s1894_s15 + $0x90] ss:$8 sps:$4 sm:$0xff]   ;;  %v1760_v25 = vld [vmem:[%s1894_s15 + $0xa4] ss:$8 sps:$4 sm:$0xff]   ;;  %v1763_v27 = vld [vmem:[%s1894_s15 + $0xa0] ss:$8 sps:$4 sm:$0xff]  }
  0x15   : > { %1586 = vmatprep.subr.bf16.mxu0 %v1738_v8  ;;  %1694 = vmatprep.subr.bf16.mxu1 %v1738_v8  ;;  %v1764_v28 = vld [vmem:[%s1894_s15 + $0x34] ss:$8 sps:$4 sm:$0xff]   ;;  %v1768_v30 = vld [vmem:[%s1894_s15 + $0x30] ss:$8 sps:$4 sm:$0xff]   ;;  %v1770_v32 = vld [vmem:[%s1894_s15 + $0x44] ss:$8 sps:$4 sm:$0xff]  }
  0x16   : > { %v1766_v29 = vld [vmem:[%s1894_s15 + $0xb4] ss:$8 sps:$4 sm:$0xff]   ;;  %v1769_v31 = vld [vmem:[%s1894_s15 + $0xb0] ss:$8 sps:$4 sm:$0xff]   ;;  %v1772_v33 = vld [vmem:[%s1894_s15 + $0xc4] ss:$8 sps:$4 sm:$0xff]  }
  0x17   : > { %v1774_v34 = vld [vmem:[%s1894_s15 + $0x40] ss:$8 sps:$4 sm:$0xff]   ;;  %v1776_v36 = vld [vmem:[%s1894_s15 + $0x54] ss:$8 sps:$4 sm:$0xff]   ;;  %v1780_v38 = vld [vmem:[%s1894_s15 + $0x50] ss:$8 sps:$4 sm:$0xff]  }
  0x18   : > { %1587 = vmatpush3.bf16.msra.mxu0 %v1739_v9  ;;  %1702 = vmatpush3.bf16.msra.mxu1 %v1739_v9  ;;  %v1775_v35 = vld [vmem:[%s1894_s15 + $0xc0] ss:$8 sps:$4 sm:$0xff]   ;;  %v1778_v37 = vld [vmem:[%s1894_s15 + $0xd4] ss:$8 sps:$4 sm:$0xff]   ;;  %v1781_v39 = vld [vmem:[%s1894_s15 + $0xd0] ss:$8 sps:$4 sm:$0xff]  }
  0x19   : > { %1588 = vmatprep.subr.bf16.mxu0 %v1740_v10  ;;  %1695 = vmatprep.subr.bf16.mxu1 %v1740_v10  ;;  %v1782_v40 = vld [vmem:[%s1894_s15 + $0x64] ss:$8 sps:$4 sm:$0xff]   ;;  %v1786_v42 = vld [vmem:[%s1894_s15 + $0x60] ss:$8 sps:$4 sm:$0xff]   ;;  %v1788_v44 = vld [vmem:[%s1894_s15 + $0x74] ss:$8 sps:$4 sm:$0xff]  }
  0x1a   : > { %v1784_v41 = vld [vmem:[%s1894_s15 + $0xe4] ss:$8 sps:$4 sm:$0xff]   ;;  %v1787_v43 = vld [vmem:[%s1894_s15 + $0xe0] ss:$8 sps:$4 sm:$0xff]   ;;  %v1790_v45 = vld [vmem:[%s1894_s15 + $0xf4] ss:$8 sps:$4 sm:$0xff]  }
  0x1b   : > { %v1792_v46 = vld [vmem:[%s1894_s15 + $0x70] ss:$8 sps:$4 sm:$0xff]  }
  0x1c   : > { %1589 = vmatpush3.bf16.msra.mxu0 %v1741_v13  ;;  %1703 = vmatpush3.bf16.msra.mxu1 %v1741_v13  ;;  %v1793_v47 = vld [vmem:[%s1894_s15 + $0xf0] ss:$8 sps:$4 sm:$0xff]  }
  0x1d   : > { %1590 = vmatprep.subr.bf16.mxu0 %v1742_v14  ;;  %1696 = vmatprep.subr.bf16.mxu1 %v1742_v14 }
  0x20   : > { %1591 = vmatpush3.bf16.msra.mxu0 %v1743_v15  ;;  %1704 = vmatpush3.bf16.msra.mxu1 %v1743_v15 }
  0x21   : > { %1592 = vmatprep.subr.bf16.mxu0 %v1744_v16  ;;  %1697 = vmatprep.subr.bf16.mxu1 %v1744_v16 }
  0x24   : > { %1593 = vmatpush3.bf16.msra.mxu0 %v1745_v17  ;;  %1705 = vmatpush3.bf16.msra.mxu1 %v1745_v17 }
  0x27   : > { %730 = vmatmul.mubr.bf16.vlgmr.msra.gmra.mrb[0].mxu0 %v1746_v18  ;;  %794 = vmatmul.mubr.bf16.vlgmr.msra.gmra.mrb[0].mxu1 %v1749_v19 }
  0x28   : > { %737 = vmatprep.mubr.bf16.mxu0 %v1752_v20  ;;  %801 = vmatprep.mubr.bf16.mxu1 %v1754_v21 }
  0x2f   : > { %738 = vmatmul.mubr.bf16.gmra.mrb[4].mxu0 %v1756_v22  ;;  %802 = vmatmul.mubr.bf16.gmra.mrb[4].mxu1 %v1757_v23 }
  0x30   : > { %745 = vmatprep.mubr.bf16.mxu0 %v1758_v24  ;;  %809 = vmatprep.mubr.bf16.mxu1 %v1760_v25 }
  0x37   : > { %746 = vmatmul.mubr.bf16.gmra.mrb[8].mxu0 %v1762_v26  ;;  %810 = vmatmul.mubr.bf16.gmra.mrb[8].mxu1 %v1763_v27 }
  0x38   : > { %753 = vmatprep.mubr.bf16.mxu0 %v1764_v28  ;;  %817 = vmatprep.mubr.bf16.mxu1 %v1766_v29 }
  0x3f   : > { %754 = vmatmul.mubr.bf16.gmra.mrb[12].mxu0 %v1768_v30  ;;  %818 = vmatmul.mubr.bf16.gmra.mrb[12].mxu1 %v1769_v31 }
  0x40   : > { %761 = vmatprep.mubr.bf16.mxu0 %v1770_v32  ;;  %825 = vmatprep.mubr.bf16.mxu1 %v1772_v33 }
  0x47   : > { %762 = vmatmul.mubr.bf16.gmra.mrb[16].mxu0 %v1774_v34  ;;  %826 = vmatmul.mubr.bf16.gmra.mrb[16].mxu1 %v1775_v35 }
  0x48   : > { %769 = vmatprep.mubr.bf16.mxu0 %v1776_v36  ;;  %833 = vmatprep.mubr.bf16.mxu1 %v1778_v37 }
  0x4f   : > { %770 = vmatmul.mubr.bf16.gmra.mrb[20].mxu0 %v1780_v38  ;;  %834 = vmatmul.mubr.bf16.gmra.mrb[20].mxu1 %v1781_v39 }
  0x50   : > { %777 = vmatprep.mubr.bf16.mxu0 %v1782_v40  ;;  %841 = vmatprep.mubr.bf16.mxu1 %v1784_v41 }
  0x57   : > { %778 = vmatmul.mubr.bf16.gmra.mrb[24].mxu0 %v1786_v42  ;;  %842 = vmatmul.mubr.bf16.gmra.mrb[24].mxu1 %v1787_v43 }
  0x58   : > { %785 = vmatprep.mubr.bf16.mxu0 %v1788_v44  ;;  %849 = vmatprep.mubr.bf16.mxu1 %v1790_v45 }
  0x5f   : > { %786 = vmatmul.mubr.bf16.gmra.mrb[28].mxu0 %v1792_v46  ;;  %850 = vmatmul.mubr.bf16.gmra.mrb[28].mxu1 %v1793_v47 }
  0xfa   : > { %v1594_v48 = vpop.f32.mrb[0].mxu0  ;;  %v1642_v49 = vpop.f32.mrb[0].mxu1 }
  0xfb   : > { %v1595_v50 = vpop.f32.mrb[1].mxu0  ;;  %v1643_v52 = vpop.f32.mrb[1].mxu1 }
  0xfc   : > { %v1596_v53 = vadd.f32 %v1595_v50, %v1594_v48  ;;  %v1644_v54 = vadd.f32 %v1643_v52, %v1642_v49  ;;  %v1597_v55 = vpop.f32.mrb[2].mxu0  ;;  %v1645_v56 = vpop.f32.mrb[2].mxu1 }
  0xfd   : > { %v1598_v58 = vpop.f32.mrb[3].mxu0  ;;  %v1646_v59 = vpop.f32.mrb[3].mxu1 }
  0xfe   : > { %v964_v60 = vmul.f32 %v1596_v53, %v1952_v51  ;;  %v980_v61 = vmul.f32 %v1644_v54, %v1952_v51  ;;  %v1599_v62 = vadd.f32 %v1598_v58, %v1597_v55  ;;  %v1647_v63 = vadd.f32 %v1646_v59, %v1645_v56 }
 0x100   : > { %v1003_v0 = vadd.f32 %v1957_v57, %v964_v60  ;;  %v1019_v1 = vadd.f32 %v1957_v57, %v980_v61  ;;  %v965_v2 = vmul.f32 %v1599_v62, %v1952_v51  ;;  %v981_v3 = vmul.f32 %v1647_v63, %v1952_v51 }
 0x102   : > { %v1004_v4 = vadd.f32 %v1957_v57, %v965_v2  ;;  %v1020_v5 = vadd.f32 %v1957_v57, %v981_v3  ;;  %v1600_v6 = vpop.f32.mrb[4].mxu0  ;;  %v1648_v7 = vpop.f32.mrb[4].mxu1  ;;  %v1035_v8 = vmax.f32 %v1003_v0, 0.0  ;;  %v1051_v9 = vmax.f32 %v1019_v1, 0.0 }
 0x103   : > { %v1601_v10 = vpop.f32.mrb[5].mxu0  ;;  %v1649_v11 = vpop.f32.mrb[5].mxu1 }
 0x104   : > { %v1036_v12 = vmax.f32 %v1004_v4, 0.0  ;;  %v1052_v13 = vmax.f32 %v1020_v5, 0.0  ;;  %v1602_v14 = vadd.f32 %v1601_v10, %v1600_v6  ;;  %v1650_v15 = vadd.f32 %v1649_v11, %v1648_v7  ;;  %v1603_v16 = vpop.f32.mrb[6].mxu0  ;;  %v1651_v17 = vpop.f32.mrb[6].mxu1 }
 0x105   : > { %v1604_v18 = vpop.f32.mrb[7].mxu0  ;;  %v1652_v19 = vpop.f32.mrb[7].mxu1 }
 0x106   : > { %v1486_v20 = vpack.c.bf16 %v1036_v12, %v1035_v8  ;;  %v1526_v21 = vpack.c.bf16 %v1052_v13, %v1051_v9  ;;  %v966_v22 = vmul.f32 %v1602_v14, %v1952_v51  ;;  %v982_v23 = vmul.f32 %v1650_v15, %v1952_v51 }
 0x107   : > { %v1605_v24 = vadd.f32 %v1604_v18, %v1603_v16  ;;  %v1653_v25 = vadd.f32 %v1652_v19, %v1651_v17 }
 0x108   : > { %1487 = vst [vmem:[%s1971_s21] sm:$0xff] %v1486_v20   ;;  %1570 = vst [vmem:[%s1971_s21 + $0x40] sm:$0xff] %v1526_v21   ;;  %v1005_v26 = vadd.f32 %v1957_v57, %v966_v22  ;;  %v1021_v27 = vadd.f32 %v1957_v57, %v982_v23 }
 0x109   : > { %v967_v28 = vmul.f32 %v1605_v24, %v1952_v51  ;;  %v983_v29 = vmul.f32 %v1653_v25, %v1952_v51 }
 0x10a   : > { %v1606_v30 = vpop.f32.mrb[8].mxu0  ;;  %v1654_v31 = vpop.f32.mrb[8].mxu1  ;;  %v1037_v40 = vmax.f32 %v1005_v26, 0.0  ;;  %v1053_v41 = vmax.f32 %v1021_v27, 0.0 }
 0x10b   : > { %v1006_v32 = vadd.f32 %v1957_v57, %v967_v28  ;;  %v1022_v33 = vadd.f32 %v1957_v57, %v983_v29  ;;  %v1607_v34 = vpop.f32.mrb[9].mxu0  ;;  %v1655_v35 = vpop.f32.mrb[9].mxu1 }
 0x10c   : > { %v1608_v36 = vadd.f32 %v1607_v34, %v1606_v30  ;;  %v1656_v37 = vadd.f32 %v1655_v35, %v1654_v31  ;;  %v1609_v38 = vpop.f32.mrb[10].mxu0  ;;  %v1657_v39 = vpop.f32.mrb[10].mxu1 }
 0x10d   : > { %v1038_v42 = vmax.f32 %v1006_v32, 0.0  ;;  %v1054_v43 = vmax.f32 %v1022_v33, 0.0  ;;  %v1610_v44 = vpop.f32.mrb[11].mxu0  ;;  %v1658_v45 = vpop.f32.mrb[11].mxu1 }
 0x10e   : > { %v968_v46 = vmul.f32 %v1608_v36, %v1952_v51  ;;  %v984_v47 = vmul.f32 %v1656_v37, %v1952_v51  ;;  %v1611_v48 = vadd.f32 %v1610_v44, %v1609_v38  ;;  %v1659_v49 = vadd.f32 %v1658_v45, %v1657_v39 }
 0x10f   : > { %v1491_v50 = vpack.c.bf16 %v1038_v42, %v1037_v40  ;;  %v1531_v52 = vpack.c.bf16 %v1054_v43, %v1053_v41 }
 0x110   : > { %v1007_v53 = vadd.f32 %v1957_v57, %v968_v46  ;;  %v1023_v54 = vadd.f32 %v1957_v57, %v984_v47  ;;  %v969_v55 = vmul.f32 %v1611_v48, %v1952_v51  ;;  %v985_v56 = vmul.f32 %v1659_v49, %v1952_v51 }
 0x111   : > { %1563 = vst [vmem:[%s1971_s21 + $0x8] sm:$0xff] %v1491_v50   ;;  %1571 = vst [vmem:[%s1971_s21 + $0x48] sm:$0xff] %v1531_v52  }
 0x112   : > { %v1008_v58 = vadd.f32 %v1957_v57, %v969_v55  ;;  %v1024_v59 = vadd.f32 %v1957_v57, %v985_v56  ;;  %v1612_v60 = vpop.f32.mrb[12].mxu0  ;;  %v1660_v61 = vpop.f32.mrb[12].mxu1  ;;  %v1039_v62 = vmax.f32 %v1007_v53, 0.0  ;;  %v1055_v63 = vmax.f32 %v1023_v54, 0.0 }
 0x113   : > { %v1613_v0 = vpop.f32.mrb[13].mxu0  ;;  %v1661_v1 = vpop.f32.mrb[13].mxu1 }
 0x114   : > { %v1040_v2 = vmax.f32 %v1008_v58, 0.0  ;;  %v1056_v3 = vmax.f32 %v1024_v59, 0.0  ;;  %v1614_v4 = vadd.f32 %v1613_v0, %v1612_v60  ;;  %v1662_v5 = vadd.f32 %v1661_v1, %v1660_v61  ;;  %v1615_v6 = vpop.f32.mrb[14].mxu0  ;;  %v1663_v7 = vpop.f32.mrb[14].mxu1 }
 0x115   : > { %v1616_v8 = vpop.f32.mrb[15].mxu0  ;;  %v1664_v9 = vpop.f32.mrb[15].mxu1 }
 0x116   : > { %v1496_v10 = vpack.c.bf16 %v1040_v2, %v1039_v62  ;;  %v1536_v11 = vpack.c.bf16 %v1056_v3, %v1055_v63  ;;  %v970_v12 = vmul.f32 %v1614_v4, %v1952_v51  ;;  %v986_v13 = vmul.f32 %v1662_v5, %v1952_v51 }
 0x117   : > { %v1617_v14 = vadd.f32 %v1616_v8, %v1615_v6  ;;  %v1665_v15 = vadd.f32 %v1664_v9, %v1663_v7 }
 0x118   : > { %1564 = vst [vmem:[%s1971_s21 + $0x10] sm:$0xff] %v1496_v10   ;;  %1572 = vst [vmem:[%s1971_s21 + $0x50] sm:$0xff] %v1536_v11   ;;  %v1009_v16 = vadd.f32 %v1957_v57, %v970_v12  ;;  %v1025_v17 = vadd.f32 %v1957_v57, %v986_v13 }
 0x119   : > { %v971_v18 = vmul.f32 %v1617_v14, %v1952_v51  ;;  %v987_v19 = vmul.f32 %v1665_v15, %v1952_v51 }
 0x11a   : > { %v1618_v20 = vpop.f32.mrb[16].mxu0  ;;  %v1666_v21 = vpop.f32.mrb[16].mxu1  ;;  %v1041_v30 = vmax.f32 %v1009_v16, 0.0  ;;  %v1057_v31 = vmax.f32 %v1025_v17, 0.0 }
 0x11b   : > { %v1010_v22 = vadd.f32 %v1957_v57, %v971_v18  ;;  %v1026_v23 = vadd.f32 %v1957_v57, %v987_v19  ;;  %v1619_v24 = vpop.f32.mrb[17].mxu0  ;;  %v1667_v25 = vpop.f32.mrb[17].mxu1 }
 0x11c   : > { %v1620_v26 = vadd.f32 %v1619_v24, %v1618_v20  ;;  %v1668_v27 = vadd.f32 %v1667_v25, %v1666_v21  ;;  %v1621_v28 = vpop.f32.mrb[18].mxu0  ;;  %v1669_v29 = vpop.f32.mrb[18].mxu1 }
 0x11d   : > { %v1042_v32 = vmax.f32 %v1010_v22, 0.0  ;;  %v1058_v33 = vmax.f32 %v1026_v23, 0.0  ;;  %v1622_v34 = vpop.f32.mrb[19].mxu0  ;;  %v1670_v35 = vpop.f32.mrb[19].mxu1 }
 0x11e   : > { %v972_v36 = vmul.f32 %v1620_v26, %v1952_v51  ;;  %v988_v37 = vmul.f32 %v1668_v27, %v1952_v51  ;;  %v1623_v38 = vadd.f32 %v1622_v34, %v1621_v28  ;;  %v1671_v39 = vadd.f32 %v1670_v35, %v1669_v29 }
 0x11f   : > { %v1501_v40 = vpack.c.bf16 %v1042_v32, %v1041_v30  ;;  %v1541_v41 = vpack.c.bf16 %v1058_v33, %v1057_v31 }
 0x120   : > { %v1011_v42 = vadd.f32 %v1957_v57, %v972_v36  ;;  %v1027_v43 = vadd.f32 %v1957_v57, %v988_v37  ;;  %v973_v44 = vmul.f32 %v1623_v38, %v1952_v51  ;;  %v989_v45 = vmul.f32 %v1671_v39, %v1952_v51 }
 0x121   : > { %1565 = vst [vmem:[%s1971_s21 + $0x18] sm:$0xff] %v1501_v40   ;;  %1573 = vst [vmem:[%s1971_s21 + $0x58] sm:$0xff] %v1541_v41  }
 0x122   : > { %v1012_v46 = vadd.f32 %v1957_v57, %v973_v44  ;;  %v1028_v47 = vadd.f32 %v1957_v57, %v989_v45  ;;  %v1624_v48 = vpop.f32.mrb[20].mxu0  ;;  %v1672_v49 = vpop.f32.mrb[20].mxu1  ;;  %v1043_v50 = vmax.f32 %v1011_v42, 0.0  ;;  %v1059_v52 = vmax.f32 %v1027_v43, 0.0 }
 0x123   : > { %v1625_v53 = vpop.f32.mrb[21].mxu0  ;;  %v1673_v54 = vpop.f32.mrb[21].mxu1 }
 0x124   : > { %v1044_v55 = vmax.f32 %v1012_v46, 0.0  ;;  %v1060_v56 = vmax.f32 %v1028_v47, 0.0  ;;  %v1626_v58 = vadd.f32 %v1625_v53, %v1624_v48  ;;  %v1674_v59 = vadd.f32 %v1673_v54, %v1672_v49  ;;  %v1627_v60 = vpop.f32.mrb[22].mxu0  ;;  %v1675_v61 = vpop.f32.mrb[22].mxu1 }
 0x125   : > { %v1628_v62 = vpop.f32.mrb[23].mxu0  ;;  %v1676_v63 = vpop.f32.mrb[23].mxu1 }
 0x126   : > { %v1506_v0 = vpack.c.bf16 %v1044_v55, %v1043_v50  ;;  %v1546_v1 = vpack.c.bf16 %v1060_v56, %v1059_v52  ;;  %v974_v2 = vmul.f32 %v1626_v58, %v1952_v51  ;;  %v990_v3 = vmul.f32 %v1674_v59, %v1952_v51 }
 0x127   : > { %v1629_v4 = vadd.f32 %v1628_v62, %v1627_v60  ;;  %v1677_v5 = vadd.f32 %v1676_v63, %v1675_v61 }
 0x128   : > { %1566 = vst [vmem:[%s1971_s21 + $0x20] sm:$0xff] %v1506_v0   ;;  %1574 = vst [vmem:[%s1971_s21 + $0x60] sm:$0xff] %v1546_v1   ;;  %v1013_v6 = vadd.f32 %v1957_v57, %v974_v2  ;;  %v1029_v7 = vadd.f32 %v1957_v57, %v990_v3 }
 0x129   : > { %v975_v8 = vmul.f32 %v1629_v4, %v1952_v51  ;;  %v991_v9 = vmul.f32 %v1677_v5, %v1952_v51 }
 0x12a   : > { %v1630_v10 = vpop.f32.mrb[24].mxu0  ;;  %v1678_v11 = vpop.f32.mrb[24].mxu1  ;;  %v1045_v20 = vmax.f32 %v1013_v6, 0.0  ;;  %v1061_v21 = vmax.f32 %v1029_v7, 0.0 }
 0x12b   : > { %v1014_v12 = vadd.f32 %v1957_v57, %v975_v8  ;;  %v1030_v13 = vadd.f32 %v1957_v57, %v991_v9  ;;  %v1631_v14 = vpop.f32.mrb[25].mxu0  ;;  %v1679_v15 = vpop.f32.mrb[25].mxu1 }
 0x12c   : > { %v1632_v16 = vadd.f32 %v1631_v14, %v1630_v10  ;;  %v1680_v17 = vadd.f32 %v1679_v15, %v1678_v11  ;;  %v1633_v18 = vpop.f32.mrb[26].mxu0  ;;  %v1681_v19 = vpop.f32.mrb[26].mxu1 }
 0x12d   : > { %v1046_v22 = vmax.f32 %v1014_v12, 0.0  ;;  %v1062_v23 = vmax.f32 %v1030_v13, 0.0  ;;  %v1634_v24 = vpop.f32.mrb[27].mxu0  ;;  %v1682_v25 = vpop.f32.mrb[27].mxu1 }
 0x12e   : > { %v976_v26 = vmul.f32 %v1632_v16, %v1952_v51  ;;  %v992_v27 = vmul.f32 %v1680_v17, %v1952_v51  ;;  %v1635_v28 = vadd.f32 %v1634_v24, %v1633_v18  ;;  %v1683_v29 = vadd.f32 %v1682_v25, %v1681_v19 }
 0x12f   : > { %v1511_v30 = vpack.c.bf16 %v1046_v22, %v1045_v20  ;;  %v1551_v31 = vpack.c.bf16 %v1062_v23, %v1061_v21 }
 0x130   : > { %v1015_v32 = vadd.f32 %v1957_v57, %v976_v26  ;;  %v1031_v33 = vadd.f32 %v1957_v57, %v992_v27  ;;  %v977_v34 = vmul.f32 %v1635_v28, %v1952_v51  ;;  %v993_v35 = vmul.f32 %v1683_v29, %v1952_v51 }
 0x131   : > { %1567 = vst [vmem:[%s1971_s21 + $0x28] sm:$0xff] %v1511_v30   ;;  %1575 = vst [vmem:[%s1971_s21 + $0x68] sm:$0xff] %v1551_v31  }
 0x132   : > { %v1016_v36 = vadd.f32 %v1957_v57, %v977_v34  ;;  %v1032_v37 = vadd.f32 %v1957_v57, %v993_v35  ;;  %v1636_v38 = vpop.f32.mrb[28].mxu0  ;;  %v1684_v39 = vpop.f32.mrb[28].mxu1  ;;  %v1047_v40 = vmax.f32 %v1015_v32, 0.0  ;;  %v1063_v41 = vmax.f32 %v1031_v33, 0.0 }
 0x133   : > { %v1637_v42 = vpop.f32.mrb[29].mxu0  ;;  %v1685_v43 = vpop.f32.mrb[29].mxu1 }
 0x134   : > { %v1048_v44 = vmax.f32 %v1016_v36, 0.0  ;;  %v1064_v45 = vmax.f32 %v1032_v37, 0.0  ;;  %v1638_v46 = vadd.f32 %v1637_v42, %v1636_v38  ;;  %v1686_v47 = vadd.f32 %v1685_v43, %v1684_v39  ;;  %v1639_v48 = vpop.f32.mrb[30].mxu0  ;;  %v1687_v49 = vpop.f32.mrb[30].mxu1 }
 0x135   : > { %v1640_v50 = vpop.f32.mrb[31].mxu0  ;;  %v1688_v52 = vpop.f32.mrb[31].mxu1 }
 0x136   : > { %v1516_v53 = vpack.c.bf16 %v1048_v44, %v1047_v40  ;;  %v1556_v54 = vpack.c.bf16 %v1064_v45, %v1063_v41  ;;  %v978_v55 = vmul.f32 %v1638_v46, %v1952_v51  ;;  %v994_v56 = vmul.f32 %v1686_v47, %v1952_v51 }
 0x137   : > { %v1641_v58 = vadd.f32 %v1640_v50, %v1639_v48  ;;  %v1689_v59 = vadd.f32 %v1688_v52, %v1687_v49 }
 0x138   : > { %1568 = vst [vmem:[%s1971_s21 + $0x30] sm:$0xff] %v1516_v53   ;;  %1576 = vst [vmem:[%s1971_s21 + $0x70] sm:$0xff] %v1556_v54   ;;  %v1017_v60 = vadd.f32 %v1957_v57, %v978_v55  ;;  %v1033_v61 = vadd.f32 %v1957_v57, %v994_v56 }
 0x139   : > { %v979_v62 = vmul.f32 %v1641_v58, %v1952_v51  ;;  %v995_v63 = vmul.f32 %v1689_v59, %v1952_v51 }
 0x13a   : > { %v1049_v2 = vmax.f32 %v1017_v60, 0.0  ;;  %v1065_v3 = vmax.f32 %v1033_v61, 0.0 }
 0x13b   : > { %v1018_v0 = vadd.f32 %v1957_v57, %v979_v62  ;;  %v1034_v1 = vadd.f32 %v1957_v57, %v995_v63 }
 0x13d   : > { %v1050_v4 = vmax.f32 %v1018_v0, 0.0  ;;  %v1066_v5 = vmax.f32 %v1034_v1, 0.0 }
 0x13f   : > { %v1521_v6 = vpack.c.bf16 %v1050_v4, %v1049_v2  ;;  %v1561_v7 = vpack.c.bf16 %v1066_v5, %v1065_v3 }
 0x141   : > { %1569 = vst [vmem:[%s1971_s21 + $0x38] sm:$0xff] %v1521_v6   ;;  %1577 = vst [vmem:[%s1971_s21 + $0x78] sm:$0xff] %v1561_v7  }
 0x142 PF: > { %s14_s17 = sadd.s32 1, %s1816_s17   ;;  %s2059_s15 = smov %s1812_s16 }
 0x143   : > { %p11_p5 = scmp.ge.s32.totalorder %s14_s17, 4   ;;  %s2060_s16 = smov %s2062_s18 }
 0x145   :  { %13 = sbr.rel (!%p11_p5) target bundleno = 2 (0x2), region = 83 }

</bundles_post_ra>
